<compile_context>
chip_gen: v6e
topology: v6e:2x2x1
jax: 0.10.0
libtpu: 0.0.40
codegen_flags: <defaults>
</compile_context>

<pallas_src>
import jax
import jax.numpy as jnp
from jax.experimental import pallas as pl
from jax.experimental.pallas import tpu as pltpu


def _round_up(x: int, m: int) -> int:
    return ((x + m - 1) // m) * m


# --------------------------------------------------------------------------------------------
# Kernel
# --------------------------------------------------------------------------------------------
def _stack_embed_kernel(cat_ref, w_ref, o_ref):
    """One M-tile of the fused multi-table lookup.

    cat_ref: (TM, n_cat) int32             codes with per-key vocab offsets already added.
    w_ref:   (P, V_pad, D_total) bf16      packed tables, split into P f32-mantissa planes.
    o_ref:   (TM, D_total) out_dtype       concatenated embeddings (full output width).
    """
    n_cat = cat_ref.shape[1]
    v_pad = w_ref.shape[1]
    num_planes = w_ref.shape[0]

    # Summed one-hot over the stacked vocabulary.  Vocab segments are disjoint, so OR-ing the
    # per-key hit masks equals the sum; one (1, V_pad) iota, boolean accumulation, single cast.
    lane_ids = jax.lax.broadcasted_iota(jnp.int32, (1, v_pad), 1)
    hit = cat_ref[:, 0:1] == lane_ids
    for i in range(1, n_cat):                      # n_cat is tiny -> unrolled at trace time
        hit = hit | (cat_ref[:, i:i + 1] == lane_ids)
    onehot = hit.astype(jnp.bfloat16)              # 0/1: exact in bf16

    # num_planes native-bf16 MXU passes; each plane product is exact (one-hot * bf16 chunk),
    # accumulation is f32.  2 planes ~ 16 mantissa bits; 3 planes ~ f32.
    acc = jnp.dot(onehot, w_ref[0], preferred_element_type=jnp.float32)
    for p in range(1, num_planes):
        acc = acc + jnp.dot(onehot, w_ref[p], preferred_element_type=jnp.float32)
    o_ref[...] = acc.astype(o_ref.dtype)


# --------------------------------------------------------------------------------------------
# One-time (model-load) packing — hoist this out of the per-step path.
# --------------------------------------------------------------------------------------------
def _pack_tables(tables, num_planes=2):
    """Block-place per-key (vocab_i, dim_i) tables into one matrix and split into bf16 planes.

    Returns (w_planes (P, V_pad, D_total) bf16, row_offsets, d_total).
    """
    vocabs = [int(t.shape[0]) for t in tables]
    dims = [int(t.shape[1]) for t in tables]
    v_total, d_total = sum(vocabs), sum(dims)
    v_pad = _round_up(max(v_total, 1), 128)        # MXU contraction dim, full lane width

    w = jnp.zeros((v_pad, d_total), jnp.float32)
    row_offsets = []
    v_off = d_off = 0
    for t, v_i, d_i in zip(tables, vocabs, dims):
        row_offsets.append(v_off)
        w = w.at[v_off:v_off + v_i, d_off:d_off + d_i].set(jnp.asarray(t, jnp.float32))
        v_off += v_i
        d_off += d_i

    # Residual split into bf16 planes: hi (+ mid (+ lo)).  Each residual subtraction is exact
    # in f32, so P planes reconstruct w with relative error <= 2^(-8*P).
    planes, rem = [], w
    for _ in range(max(1, int(num_planes))):
        p = rem.astype(jnp.bfloat16)
        planes.append(p)
        rem = rem - p.astype(jnp.float32)
    w_planes = jnp.stack(planes)                   # (P, V_pad, D_total) bf16

    return w_planes, tuple(row_offsets), d_total


def pack_stack_categorical_embedding(tables, encoder_keys, decoder_keys, ignore_keys=(),
                                     *, num_planes=2):
    """Pack the embedding tables once (model-load time).  Returns (enc_pack, dec_pack)."""
    def pack_side(keys):
        used = [(i, k) for i, k in enumerate(keys) if k in tables and k not in ignore_keys]
        if not used:
            return None                            # embedding size 0 -> zero-width output
        cols = tuple(i for i, _ in used)
        w_planes, row_offsets, d_total = _pack_tables([tables[k] for _, k in used], num_planes)
        return dict(cols=cols, w_planes=w_planes, row_offsets=row_offsets, d_total=d_total)

    return pack_side(encoder_keys), pack_side(decoder_keys)


# --------------------------------------------------------------------------------------------
# Per-step apply
# --------------------------------------------------------------------------------------------
def _embed_side(cat, w_planes, row_offsets, d_total, *, tile_m=1024, out_dtype=jnp.float32):
    """cat: (B, S, n_cat) codes; returns (B, S, d_total) concatenated embeddings."""
    b, s, n_cat = cat.shape
    m = b * s
    if m == 0 or d_total == 0:
        return jnp.zeros((b, s, d_total), out_dtype)

    num_planes, v_pad, d_w = w_planes.shape
    assert d_w == d_total

    # Pre-add per-key vocab offsets: the kernel one-hot loop has no per-key "+ base".
    cat2d = cat.reshape(m, n_cat).astype(jnp.int32) + jnp.asarray(row_offsets, jnp.int32)[None, :]

    # M tiling: multiple of 8 (sublane); >= 2 programs whenever m > 8 (v7x has 2 TensorCores);
    # large tiles (default 1024) amortize the ~0.35us per-grid-step overhead on v5e/v6e.
    if m <= 8:
        tm = m                                     # single full-extent block
    else:
        tm = min(_round_up(tile_m, 8), _round_up(-(-m // 2), 8))
    m_pad = _round_up(m, tm)
    if m_pad != m:
        # Padded rows carry all-zero codes -> they select row 0 of table 0 only; sliced off below.
        cat2d = jnp.pad(cat2d, ((0, m_pad - m), (0, 0)))

    # Explicit VMEM budget from the computed footprint (default scoped limit is 16/32 MiB).
    d_lane = _round_up(d_total, 128)
    out_isz = jnp.dtype(out_dtype).itemsize
    est = (num_planes * v_pad * d_lane * 2          # W planes, single-buffered
           + 2 * tm * 128 * 4                       # index tile (lane-padded), double-buffered
           + 2 * tm * d_lane * out_isz              # output tile, double-buffered
           + tm * v_pad * 6 + tm * d_lane * 4)      # in-kernel temps (masks, bf16 one-hot, acc)
    vmem_limit = int(min(max(2 * est, 16 << 20), 64 << 20))

    # Packed tables: constant index_map, DMA'd once; single-buffer to save VMEM (v7x: 64 MiB).
    try:
        w_spec = pl.BlockSpec((num_planes, v_pad, d_total), lambda i: (0, 0, 0),
                              pipeline_mode=pl.Buffered(1))
    except TypeError:  # older jax without per-BlockSpec pipeline_mode
        w_spec = pl.BlockSpec((num_planes, v_pad, d_total), lambda i: (0, 0, 0))

    out = pl.pallas_call(
        _stack_embed_kernel,
        out_shape=jax.ShapeDtypeStruct((m_pad, d_total), out_dtype),
        grid=(m_pad // tm,),
        in_specs=[
            pl.BlockSpec((tm, n_cat), lambda i: (i, 0)),   # index tile: pipelined over M
            w_spec,                                        # packed tables: VMEM-resident
        ],
        # Full output width (== array last dim) -> no post-kernel column slice; output DMA moves
        # exactly the needed bytes.
        out_specs=pl.BlockSpec((tm, d_total), lambda i: (i, 0)),
        compiler_params=pltpu.CompilerParams(
            dimension_semantics=("parallel",),             # rows independent -> megacore sharding
            vmem_limit_bytes=vmem_limit,
        ),
    )(cat2d, w_planes)

    if m_pad != m:
        out = out[:m]
    return out.reshape(b, s, d_total)


def apply_stack_categorical_embedding(encoder_cat, decoder_cat, enc_pack, dec_pack,
                                      *, tile_m=1024, out_dtype=jnp.float32):
    """Per-step forward, using tables prepacked by pack_stack_categorical_embedding."""
    def one_side(cat, pk):
        if pk is None:
            return jnp.zeros((*cat.shape[:-1], 0), out_dtype)
        cols = pk["cols"]
        cat_sel = cat if cols == tuple(range(cat.shape[-1])) else cat[..., jnp.asarray(cols)]
        return _embed_side(cat_sel, pk["w_planes"], pk["row_offsets"], pk["d_total"],
                           tile_m=tile_m, out_dtype=out_dtype)

    return one_side(encoder_cat, enc_pack), one_side(decoder_cat, dec_pack)


def stack_categorical_embedding(encoder_cat, decoder_cat, tables, encoder_keys, decoder_keys,
                                ignore_keys=(), *, num_planes=2, tile_m=1024,
                                out_dtype=jnp.float32):
    """Convenience one-shot wrapper matching the torch module's forward.

    In production, call pack_stack_categorical_embedding ONCE at model load and reuse
    apply_stack_categorical_embedding per step (packing is weight-only work).
    """
    enc_pack, dec_pack = pack_stack_categorical_embedding(
        tables, encoder_keys, decoder_keys, ignore_keys, num_planes=num_planes)
    return apply_stack_categorical_embedding(encoder_cat, decoder_cat, enc_pack, dec_pack,
                                             tile_m=tile_m, out_dtype=out_dtype)


if __name__ == "__main__":
    batch, seq = 2, 8
    embedding_sizes = {"weekday": (7, 8), "hour": (24, 16), "holiday": (2, 4), "event": (5, 6)}
    encoder_keys = ["weekday", "hour", "event"]   # "event" is in ignore_keys -> filtered out
    decoder_keys = ["weekday", "holiday"]         # "weekday" table shared with the encoder
    ignore_keys = ["event"]

    root = jax.random.PRNGKey(0)
    k_tab, k_enc, k_dec = jax.random.split(root, 3)

    # nn.Embedding default init: N(0, 1)
    tab_keys = jax.random.split(k_tab, len(embedding_sizes))
    tables = {name: jax.random.normal(kk, embedding_sizes[name], dtype=jnp.float32)
              for kk, name in zip(tab_keys, embedding_sizes)}

    def make_cat(key, names):
        cols, subkeys = [], jax.random.split(key, len(names))
        for kk, name in zip(subkeys, names):
            cols.append(jax.random.randint(kk, (batch, seq), 0, embedding_sizes[name][0]))
        return jnp.stack(cols, axis=-1)

    encoder_cat = make_cat(k_enc, encoder_keys)   # (2, 8, 3) int32
    decoder_cat = make_cat(k_dec, decoder_keys)   # (2, 8, 2) int32

    # Load-time packing (hoisted out of the step path), then per-step apply.
    enc_pack, dec_pack = pack_stack_categorical_embedding(
        tables, encoder_keys, decoder_keys, ignore_keys, num_planes=2)
    enc_out, dec_out = apply_stack_categorical_embedding(
        encoder_cat, decoder_cat, enc_pack, dec_pack)
    jax.block_until_ready((enc_out, dec_out))

    # Plain-JAX reference: gather + concat, exactly the torch forward.
    def ref_side(cat, keys):
        parts = [tables[k][cat[..., i]] for i, k in enumerate(keys)
                 if k in tables and k not in ignore_keys]
        if not parts:
            return jnp.zeros((*cat.shape[:-1], 0), jnp.float32)
        return jnp.concatenate(parts, axis=-1)

    enc_ref = ref_side(encoder_cat, encoder_keys)
    dec_ref = ref_side(decoder_cat, decoder_keys)

    assert enc_out.shape == (batch, seq, 8 + 16), enc_out.shape
    assert dec_out.shape == (batch, seq, 8 + 4), dec_out.shape
    # 2 bf16 planes reconstruct the f32 tables with relative error <= 2^-16 (~1.5e-5);
    # use num_planes=3 in pack_stack_categorical_embedding for ~f32-exact lookups.
    assert jnp.allclose(enc_out, enc_ref, atol=1e-6, rtol=5e-5)
    assert jnp.allclose(dec_out, dec_ref, atol=1e-6, rtol=5e-5)

    print("KERNEL_OK")
</pallas_src>

<mosaic_0001>
module attributes {stable_mosaic.version = 11 : i64} {
  func.func @_stack_embed_kernel(%arg0: i32, %arg1: memref<8x2xi32, #tpu.memory_space<vmem>>, %arg2: memref<2x128x24xbf16, #tpu.memory_space<vmem>>, %arg3: memref<8x24xf32, #tpu.memory_space<vmem>>) attributes {dimension_semantics = [#tpu.dimension_semantics<parallel>], iteration_bounds = array<i64: 2>, scalar_prefetch = 0 : i64, scratch_operands = 0 : i64, tpu.core_type = #tpu.core_type<tc>, window_params = [{transform_indices = @transform_0, window_bounds = array<i64: 8, 2>}, {pipeline_mode = #tpu.pipeline_mode<synchronous>, transform_indices = @transform_1, window_bounds = array<i64: 2, 128, 24>}, {transform_indices = @transform_2, window_bounds = array<i64: 8, 24>}]} {
    %0 = tpu.iota {dimensions = array<i32: 1>} : vector<1x128xi32>
    %c0 = arith.constant 0 : index
    %c0_0 = arith.constant 0 : index
    %1 = vector.load %arg1[%c0, %c0_0] : memref<8x2xi32, #tpu.memory_space<vmem>>, vector<8x1xi32>
    %2 = vector.broadcast %1 : vector<8x1xi32> to vector<8x128xi32>
    %3 = vector.broadcast %0 : vector<1x128xi32> to vector<8x128xi32>
    %4 = arith.cmpi eq, %2, %3 : vector<8x128xi32>
    %c0_1 = arith.constant 0 : index
    %c1 = arith.constant 1 : index
    %5 = vector.load %arg1[%c0_1, %c1] : memref<8x2xi32, #tpu.memory_space<vmem>>, vector<8x1xi32>
    %6 = vector.broadcast %5 : vector<8x1xi32> to vector<8x128xi32>
    %7 = vector.broadcast %0 : vector<1x128xi32> to vector<8x128xi32>
    %8 = arith.cmpi eq, %6, %7 : vector<8x128xi32>
    %9 = arith.ori %4, %8 : vector<8x128xi1>
    %10 = arith.extui %9 : vector<8x128xi1> to vector<8x128xi32>
    %11 = arith.sitofp %10 : vector<8x128xi32> to vector<8x128xf32>
    %12 = arith.truncf %11 : vector<8x128xf32> to vector<8x128xbf16>
    %c0_2 = arith.constant 0 : index
    %c0_3 = arith.constant 0 : index
    %c0_4 = arith.constant 0 : index
    %13 = vector.load %arg2[%c0_2, %c0_3, %c0_4] : memref<2x128x24xbf16, #tpu.memory_space<vmem>>, vector<1x128x24xbf16>
    %14 = vector.shape_cast %13 : vector<1x128x24xbf16> to vector<128x24xbf16>
    %cst = arith.constant dense<0.000000e+00> : vector<8x24xf32>
    %15 = tpu.matmul %12, %14, %cst {dimension_numbers = #tpu.dot_dimension_numbers<[1], [0], [0], [1], [0, 0, 1, 1], [], []>} : vector<8x128xbf16>, vector<128x24xbf16>, vector<8x24xf32> -> vector<8x24xf32>
    %c1_5 = arith.constant 1 : index
    %c0_6 = arith.constant 0 : index
    %c0_7 = arith.constant 0 : index
    %16 = vector.load %arg2[%c1_5, %c0_6, %c0_7] : memref<2x128x24xbf16, #tpu.memory_space<vmem>>, vector<1x128x24xbf16>
    %17 = vector.shape_cast %16 : vector<1x128x24xbf16> to vector<128x24xbf16>
    %cst_8 = arith.constant dense<0.000000e+00> : vector<8x24xf32>
    %18 = tpu.matmul %12, %17, %cst_8 {dimension_numbers = #tpu.dot_dimension_numbers<[1], [0], [0], [1], [0, 0, 1, 1], [], []>} : vector<8x128xbf16>, vector<128x24xbf16>, vector<8x24xf32> -> vector<8x24xf32>
    %19 = arith.addf %15, %18 : vector<8x24xf32>
    %c0_9 = arith.constant 0 : index
    %c0_10 = arith.constant 0 : index
    %20 = vector.load %arg3[%c0_9, %c0_10] : memref<8x24xf32, #tpu.memory_space<vmem>>, vector<8x24xf32>
    tpu.vector_store %arg3[%c0_9, %c0_10], %19 {strides = array<i32>} : memref<8x24xf32, #tpu.memory_space<vmem>>, vector<8x24xf32>,
    return
  }
  func.func @transform_0(%arg0: i32) -> (i32, i32) {
    %c0_i32 = arith.constant 0 : i32
    %c0_i32_0 = arith.constant 0 : i32
    return %arg0, %c0_i32 : i32, i32
  }
  func.func @transform_1(%arg0: i32) -> (i32, i32, i32) {
    %c0_i32 = arith.constant 0 : i32
    %c0_i32_0 = arith.constant 0 : i32
    %c0_i32_1 = arith.constant 0 : i32
    %c0_i32_2 = arith.constant 0 : i32
    return %c0_i32, %c0_i32_0, %c0_i32_1 : i32, i32, i32
  }
  func.func @transform_2(%arg0: i32) -> (i32, i32) {
    %c0_i32 = arith.constant 0 : i32
    %c0_i32_0 = arith.constant 0 : i32
    return %arg0, %c0_i32 : i32, i32
  }
}

</mosaic_0001>

<bundles_post_ra>
// kernel: tpu_custom_call.1
= control target key start
LH: loop header
LB: loop body
LE: loop exit
PB: predicated region body
PF: predicated region fallthrough
CT: control target
= control target key end

     0   :  { %7 = vsyncpa [#allocation3], 0  ;;  %s836_s0 = inlined_call_operand.vmem [shape: s32[16,2], index: 0, kind: input, shape index: {}]   ;;  %s837_s1 = inlined_call_operand.vmem [shape: bf16[2,128,24], index: 1, kind: input, shape index: {}]   ;;  %s838_s2 = inlined_call_operand.hbm [shape: f32[16,24], index: 2, kind: output, shape index: {}]  }
   0x1   :  { %9 = vsyncpa [#allocation3 + $0x1], 0  ;;  %s689_s9 = smov 0   ;;  %s691_s10 = smov 0  }
   0x2   :  { %s693_s11 = smov 0   ;;  %s695_s12 = smov 0  }
   0x3 LB: > { %s710_s13 = sadd.s32 4294967295, %s666_s12   ;;  %s439_s14 = sadd.s32 4294967294, %s666_s12   ;;  %s666_s12 = sphi %s695_s12, %s844_s12   ;;  %s662_s11 = sphi %s693_s11, %s843_s11   ;;  %s658_s10 = sphi %s691_s10, %s842_s10   ;;  %s654_s9 = sphi %s689_s9, %s841_s9  }
   0x4   : > { %s714_s15 = sadd.s32 1, %s666_s12   ;;  %s69_s16 = sadd.s32 1, %s662_s11 }
   0x5   : > { %s66_s17 = ssub.s32 %s666_s12, %s714_s15  ;;  %p79_p0 = scmp.ne.s32.totalorder %s662_s11, %s658_s10 }
   0x6   : > { %p67_p1 = scmp.eq.s32.totalorder %s66_s17, 0  ;;  %p80_p2 = scmp.eq.s32.totalorder %s710_s13, 1 }
   0x7   : > { %p85_p3 = scmp.ne.s32.totalorder %s658_s10, %s654_s9  ;;  %p86_p4 = scmp.eq.s32.totalorder %s439_s14, 1 }
   0x8   : > { %s725_s18 = scalar_select %p67_p1, %s662_s11, %s69_s16  }
   0x9   : > { %p727_p5 = por %p80_p2, %p79_p0  ;;  %p731_p6 = por %p86_p4, %p85_p3 }
   0xa   : > { %p442_p7 = scmp.ge.s32.totalorder %s666_s12, 1  ;;  %p114_p8 = scmp.lt.s32.totalorder %s666_s12, 3 }
   0xc   : > { %p115_p9 = pnand %p442_p7, %p114_p8 }
   0xd   : > { %p135_p10 = scmp.lt.s32.totalorder (!%p115_p9), %s710_s13, 1  ;;  %s132_s17 = sand.u32 (!%p115_p9), 1, %s658_s10  }
   0xe   : > { %118 = sbr.rel (%p115_p9) target bundleno = 365 (0x16d), region = 28  ;;  %s443_s21 = sshll.u32 (!%p115_p9), %s132_s17, 3 }
   0xf   : > { %s483_s22 = sshll.u32 (!%p115_p9), %s710_s13, 7  ;;  %s673_s29 = smov (!%p115_p9), [#allocation2]  }
  0x10   : > { %s795_s27 = scalar_lea.hbm (!%p115_p9), %s838_s2, %s483_s22  ;;  %s610_s30 = sshll.u32 (!%p115_p9), %s673_s29, 4  ;;  %s611_s30 = int_to_ptr.vmem [resolvable:$false] %s610_s30 }
  0x11   : > { %s612_s3 = scalar_lea.vmem (!%p115_p9), %s611_s30, 256 }
  0x13   : > { %v668_v0 = vmov 0   ;;  %v669_v1 = vmov 0.0   ;;  %v590_v2 = vld [vmem:[%s837_s1 + $0x78] sm:$0xff]   ;;  %s136_s23 = scalar_select %p135_p10, %s710_s13, 1  ;;  %v592_v4 = vld [vmem:[%s837_s1 + $0x70] sm:$0xff]   ;;  %v594_v7 = vld [vmem:[%s837_s1 + $0x68] sm:$0xff]   ;;  %v140_v20 = vlaneseq }
  0x14   : > { %588 = vset.pattern.permute.xlu0 %v668_v0  ;;  %504 = vmatprep.subr.bf16.mxu0 %v669_v1  ;;  %v591_v3 = vld [vmem:[%s837_s1 + $0x38] sm:$0xff]   ;;  %v593_v5 = vld [vmem:[%s837_s1 + $0x30] sm:$0xff]   ;;  %v595_v8 = vld [vmem:[%s837_s1 + $0x28] sm:$0xff]   ;;  %vm670_vm0 = vmmov 0   ;;  %v671_v9 = vmov 1   ;;  %vm364_vm5 = vcmask 195584  }
  0x15   : > { %524 = vmatprep.subr.bf16.mxu1 %v669_v1  ;;  %505 = vmatpush3.bf16.msra.mxu0 %v590_v2  ;;  %s444_s28 = sshll.u32 %s136_s23, 3  ;;  %v596_v10 = vld [vmem:[%s837_s1 + $0x60] sm:$0xff]   ;;  %v598_v12 = vld [vmem:[%s837_s1 + $0x58] sm:$0xff]   ;;  %v600_v14 = vld [vmem:[%s837_s1 + $0x50] sm:$0xff]   ;;  %v141_v22 = vand.u32 127, %v140_v20  ;;  %s134_s23 = scalar_lea.vmem [#allocation2], %s443_s21 }
  0x16   : > { %525 = vmatpush3.bf16.msra.mxu1 %v591_v3  ;;  %506 = vmatprep.subr.bf16.mxu0 %v669_v1  ;;  %s138_s5 = scalar_lea.vmem %s836_s0, %s444_s28  ;;  %v597_v11 = vld [vmem:[%s837_s1 + $0x20] sm:$0xff]   ;;  %v599_v13 = vld [vmem:[%s837_s1 + $0x18] sm:$0xff]   ;;  %v601_v15 = vld [vmem:[%s837_s1 + $0x10] sm:$0xff]   ;;  %v672_v24 = vmov 1.0|1.0   ;;  %s380_s24 = sshll.u32 %s134_s23, 4  ;;  %s797_s24 = int_to_ptr.vmem [resolvable:$true] %s380_s24 }
  0x17   : > { %526 = vmatprep.subr.bf16.mxu1 %v669_v1  ;;  %v142_v6 = vld [vmem:[%s138_s5] sm:$0xff]  ;;  %520 = vmatprep.mubr.msk.bf16.mxu0 %vm670_vm0, %v669_v1  ;;  %v602_v16 = vld [vmem:[%s837_s1 + $0x48] sm:$0xff]   ;;  %s367_s13 = scalar_lea.sflag [#allocation3], %s132_s17  ;;  %s606_s28 = scalar_lea.vmem %s797_s24, 128 }
  0x18   : > { %144 = vperm.xlu0 %588, %v142_v6   ;;  %540 = vmatprep.mubr.msk.bf16.mxu1 %vm670_vm0, %v669_v1  ;;  %v603_v17 = vld [vmem:[%s837_s1 + $0x8] sm:$0xff]   ;;  %v604_v18 = vld [vmem:[%s837_s1 + $0x40] sm:$0xff]   ;;  %p607_p11 = scmp.ne.s32.totalorder %s797_s24, %s606_s28  ;;  %p613_p0 = scmp.lt.s32.totalorder %s797_s24, %s611_s30 }
  0x19   : > { %507 = vmatpush3.bf16.msra.mxu0 %v592_v4  ;;  %v605_v19 = vld [vmem:[%s837_s1] sm:$0xff]   ;;  %p614_p1 = scmp.lt.s32.totalorder %s612_s3, %s606_s28 }
  0x1a   : > { %527 = vmatpush3.bf16.msra.mxu1 %v593_v5  ;;  %508 = vmatprep.subr.bf16.mxu0 %v669_v1  ;;  %p608_p12 = pnand %p607_p11, %p727_p5 }
  0x1b   : > { %528 = vmatprep.subr.bf16.mxu1 %v669_v1  ;;  %p615_p2 = por %p614_p1, %p613_p0 }
  0x1c   : > { %589 = vset.pattern.permute.xlu0 %v671_v9  ;;  %p609_p13 = pneg %p608_p12 }
  0x1d   : > { %509 = vmatpush3.bf16.msra.mxu0 %v594_v7  ;;  %148 = vperm.xlu0 %589, %v142_v6  }
  0x1e   : > { %529 = vmatpush3.bf16.msra.mxu1 %v595_v8  ;;  %510 = vmatprep.subr.bf16.mxu0 %v669_v1  ;;  %p616_p3 = pnand %p615_p2, %p609_p13 }
  0x1f   : > { %530 = vmatprep.subr.bf16.mxu1 %v669_v1 }
  0x21   : > { %511 = vmatpush3.bf16.msra.mxu0 %v596_v10 }
  0x22   : > { %531 = vmatpush3.bf16.msra.mxu1 %v597_v11  ;;  %512 = vmatprep.subr.bf16.mxu0 %v669_v1 }
  0x23   : > { %532 = vmatprep.subr.bf16.mxu1 %v669_v1 }
  0x25   : > { %513 = vmatpush3.bf16.msra.mxu0 %v598_v12 }
  0x26   : > { %533 = vmatpush3.bf16.msra.mxu1 %v599_v13  ;;  %514 = vmatprep.subr.bf16.mxu0 %v669_v1 }
  0x27   : > { %534 = vmatprep.subr.bf16.mxu1 %v669_v1 }
  0x29   : > { %515 = vmatpush3.bf16.msra.mxu0 %v600_v14 }
  0x2a   : > { %535 = vmatpush3.bf16.msra.mxu1 %v601_v15  ;;  %516 = vmatprep.subr.bf16.mxu0 %v669_v1 }
  0x2b   : > { %536 = vmatprep.subr.bf16.mxu1 %v669_v1 }
  0x2d   : > { %517 = vmatpush3.bf16.msra.mxu0 %v602_v16 }
  0x2e   : > { %537 = vmatpush3.bf16.msra.mxu1 %v603_v17  ;;  %518 = vmatprep.subr.bf16.mxu0 %v669_v1 }
  0x2f   : > { %538 = vmatprep.subr.bf16.mxu1 %v669_v1 }
  0x31   : > { %519 = vmatpush3.bf16.msra.mxu0 %v604_v18 }
  0x32   : > { %539 = vmatpush3.bf16.msra.mxu1 %v605_v19 }
  0x93   : > { %v145_v21 = vpop.permute.xlu0 %144 }
  0x94   : > { %vm146_vm1 = vcmp.eq.s32.totalorder %v145_v21, %v141_v22 }
  0x98   : > { %v149_v23 = vpop.permute.xlu0 %148 }
  0x99   : > { %vm150_vm2 = vcmp.eq.s32.totalorder %v149_v23, %v141_v22 }
  0x9a   : > { %vm151_vm3 = vmor %vm146_vm1, %vm150_vm2 }
  0x9b   : > { %vm470_vm4 = vmpackc.low %vm151_vm3, %vm151_vm3 }
  0x9c   : > { %521 = vmatmul.mubr.msk.bf16.vlgmr.msra.gmra.mxu0 %vm470_vm4, %v672_v24  ;;  %541 = vmatmul.mubr.msk.bf16.vlgmr.msra.gmra.mxu1 %vm470_vm4, %v672_v24 }
 0x15c   : > { %v270_v25 = vpop.f32.mrf.mxu0  ;;  %v358_v26 = vpop.f32.mrf.mxu1 }
 0x15d   : > { %v359_v27 = vadd.f32 %v358_v26, %v270_v25 }
 0x15e   : > { %v522_v28 = vpop.f32.mrf.mxu0  ;;  %v542_v29 = vpop.f32.mrf.mxu1 }
 0x15f   : > { %365 = vst.msk [vmem:[%s134_s23] sm:$0xff] %vm364_vm5, %v359_v27 }
 0x160   : > { %v273_v30 = vpop.f32.mrf.mxu0  ;;  %v361_v31 = vpop.f32.mrf.mxu1 }
 0x161   : > { %619 = shalt.err (!%p616_p3)
}
 0x162   : > { %s620_s4 = scalar_lea.hbm %s795_s27, 128  ;;  %s624_s7 = scalar_lea.hbm %s838_s2, 256 }
 0x163   : > { %p621_p4 = scmp.ne.s32.totalorder %s795_s27, %s620_s4  ;;  %p625_p9 = scmp.lt.s32.totalorder %s795_s27, %s838_s2 }
 0x164   : > { %p626_p10 = scmp.lt.s32.totalorder %s624_s7, %s620_s4 }
 0x165   : > { %p622_p7 = pnand %p621_p4, %p727_p5 }
 0x166   : > { %p627_p11 = por %p626_p10, %p625_p9 }
 0x167   : > { %p623_p8 = pneg %p622_p7 }
 0x169   : > { %p628_p12 = pnand %p627_p11, %p623_p8 }
 0x16b   : > { %631 = shalt.err (!%p628_p12)
}
 0x16c   : > { %544 = dma.vmem_to_hbm [thread:$0]  (%p727_p5), %s797_s24, 128, %s795_s27, %s367_s13   ;;  %v523_v32 = vpop.f32.mrf.mxu0  ;;  %v543_v33 = vpop.f32.mrf.mxu1 }
 0x16d PF: > { %p550_p13 = scmp.ge.s32.totalorder %s666_s12, 2  ;;  %s392_s16 = sand.u32 1, %s654_s9  }
 0x16e   : > { %s393_s17 = scalar_lea.sflag [#allocation3], %s392_s16 }
 0x16f   : > { %p547_p0 = pnand %p550_p13, %p731_p6 }
 0x171   : > { %p548_p1 = pneg %p547_p0 }
 0x173   : > { %649 = dma.done.wait (%p548_p1), %s393_s17, 128  }
 0x174   : > { %651 = vsyncadd (%p548_p1), %s393_s17, 4294967168  ;;  %p12_p5 = scmp.ge.s32.totalorder %s714_s15, 4   ;;  %s841_s9 = smov %s658_s10 }
 0x175   : > { %s842_s10 = smov %s662_s11  ;;  %s843_s11 = smov %s725_s18 }
 0x176   : > { %s844_s12 = smov %s714_s15  ;;  %14 = sbr.rel (!%p12_p5) target bundleno = 3 (0x3), region = 64 }
 0x17b   :  { %398 = vsyncpa [#allocation3], 1 }
 0x17c   :  { %400 = vsyncpa [#allocation3 + $0x1], 1 }

</bundles_post_ra>
